<compile_context>
chip_gen: v5e
topology: v5e:2x2
jax: 0.10.0
libtpu: 0.0.40
codegen_flags: <defaults>
</compile_context>

<pallas_src>
import jax
import jax.numpy as jnp
from jax.experimental import pallas as pl
from jax.experimental.pallas import tpu as pltpu

LANES = 128
_MIB = 1024 * 1024


def _tpu_vmem_bytes(default: int = 128 * _MIB) -> int:
    """Best-effort physical VMEM capacity query (trace-time); safe fallback."""
    try:
        info = pltpu.get_tpu_info()
        for attr in ("vmem_capacity_bytes", "vmem_size_bytes", "vmem_bytes"):
            v = getattr(info, attr, None)
            if isinstance(v, int) and v > 0:
                return v
    except Exception:
        pass
    return default


def _isru_kernel(a_ref, z_ref, o_ref):
    # a_ref: SMEM scalar parameter (shape (1,)); z_ref / o_ref: VMEM tiles.
    a = a_ref[0].astype(jnp.float32)
    z = z_ref[...].astype(jnp.float32)
    # ISRU: z * rsqrt(1 + a*z^2).  rsqrt goes to the EUP (free slot here).
    o_ref[...] = (z * jax.lax.rsqrt(1.0 + a * z * z)).astype(o_ref.dtype)


def _isru_jnp(z_flat: jax.Array, a_arr: jax.Array) -> jax.Array:
    """Plain-jnp path for tiny / tail pieces (< 128 elements)."""
    zf = z_flat.astype(jnp.float32)
    af = a_arr.astype(jnp.float32)  # shape (1,), broadcasts
    return (zf * jax.lax.rsqrt(1.0 + af * zf * zf)).astype(z_flat.dtype)


def _isru_slab(slab: jax.Array, a_arr: jax.Array) -> jax.Array:
    """Run the Pallas kernel on a lane-dense (rows, 128) slab."""
    rows = slab.shape[0]
    dtype = slab.dtype
    itemsize = jnp.dtype(dtype).itemsize

    vmem_cap = _tpu_vmem_bytes()
    # 8 MiB blocks on v7x (faster HBM, 64 MiB VMEM), 4 MiB elsewhere.
    tile_bytes = 8 * _MIB if vmem_cap <= 64 * _MIB else 4 * _MIB
    tile_rows = max(8, tile_bytes // (LANES * itemsize))  # multiple of 8
    tile_rows = min(tile_rows, rows)  # full-dim block allowed if rows is small
    grid = (pl.cdiv(rows, tile_rows),)

    # Never claim all physical VMEM (v7x has only 64 MiB); 48 MiB holds the
    # double-buffered in+out blocks (<= 32 MiB) with headroom for scratch.
    vmem_limit = min(48 * _MIB, max(vmem_cap - 16 * _MIB, 32 * _MIB))

    n = rows * LANES
    cost = pl.CostEstimate(
        flops=4 * n,
        transcendentals=n,
        bytes_accessed=2 * n * itemsize,
    )

    return pl.pallas_call(
        _isru_kernel,
        out_shape=jax.ShapeDtypeStruct((rows, LANES), dtype),
        grid_spec=pltpu.PrefetchScalarGridSpec(
            num_scalar_prefetch=0,
            grid=grid,
            in_specs=[
                pl.BlockSpec(memory_space=pltpu.SMEM),               # scalar a
                pl.BlockSpec((tile_rows, LANES), lambda i: (i, 0)),  # z tile
            ],
            out_specs=pl.BlockSpec((tile_rows, LANES), lambda i: (i, 0)),
        ),
        compiler_params=pltpu.CompilerParams(
            dimension_semantics=("parallel",),   # shards across TCs on v7x
            vmem_limit_bytes=vmem_limit,
        ),
        cost_estimate=cost,
    )(a_arr, slab)


def isru(z: jax.Array, a=1.0) -> jax.Array:
    """Elementwise ISRU for any shape / float dtype; matches the PyTorch module."""
    orig_shape = z.shape
    a_arr = jnp.asarray(a, dtype=jnp.float32).reshape(1)

    flat = z.reshape(-1)
    n = flat.shape[0]
    if n == 0:
        return z

    n_main = (n // LANES) * LANES  # 128-aligned prefix length

    if n_main == 0:
        # Tiny input (< 128 elems): not worth a kernel launch.
        return _isru_jnp(flat, a_arr).reshape(orig_shape)

    if n_main == n:
        # Aligned fast path: zero extra HBM copies (reshape is metadata-only).
        out = _isru_slab(flat.reshape(n // LANES, LANES), a_arr)
        return out.reshape(orig_shape)

    # Ragged: kernel on the aligned prefix; <128-element tail in plain jnp.
    main = _isru_slab(flat[:n_main].reshape(n_main // LANES, LANES), a_arr)
    tail = _isru_jnp(flat[n_main:], a_arr)
    return jnp.concatenate([main.reshape(-1), tail]).reshape(orig_shape)


def isru_ref(z: jax.Array, a=1.0) -> jax.Array:
    """Pure-JAX reference matching the PyTorch forward: z / sqrt(1 + a*z^2)."""
    zf = z.astype(jnp.float32)
    af = jnp.asarray(a, dtype=jnp.float32)
    return (zf / jnp.sqrt(1.0 + af * zf * zf)).astype(z.dtype)


if __name__ == "__main__":
    key = jax.random.PRNGKey(0)

    # NCHW input, small shape (2*4*16*16 = 2048 elems -> aligned fast path).
    x = jax.random.normal(key, (2, 4, 16, 16), dtype=jnp.float32)

    # Matches nn.Parameter(torch.tensor([a])) with default a = 1.0.
    a_param = 1.0

    y = jax.block_until_ready(isru(x, a=a_param))
    y_ref = isru_ref(x, a=a_param)
    assert y.shape == x.shape and y.dtype == x.dtype
    assert jnp.allclose(y, y_ref, atol=1e-5, rtol=1e-5), "mismatch vs reference"

    # Ragged path (prefix through kernel + <128-element jnp tail), a != 1.
    x2 = jax.random.normal(jax.random.PRNGKey(1), (3, 5, 17), dtype=jnp.float32)
    y2 = jax.block_until_ready(isru(x2, a=0.5))
    assert jnp.allclose(y2, isru_ref(x2, a=0.5), atol=1e-5, rtol=1e-5)

    # Tiny (<128 elems) pure-jnp path, like the docstring example randn(2).
    x3 = jax.random.normal(jax.random.PRNGKey(2), (2,), dtype=jnp.float32)
    y3 = jax.block_until_ready(isru(x3, a=a_param))
    assert jnp.allclose(y3, isru_ref(x3, a=a_param), atol=1e-5, rtol=1e-5)

    # bf16 input exercises the dtype-aware tile sizing.
    x4 = jax.random.normal(jax.random.PRNGKey(3), (2, 4, 16, 16), dtype=jnp.bfloat16)
    y4 = jax.block_until_ready(isru(x4, a=a_param))
    assert jnp.allclose(
        y4.astype(jnp.float32), isru_ref(x4, a=a_param).astype(jnp.float32),
        atol=1e-2, rtol=1e-2,
    )

    print("KERNEL_OK")
</pallas_src>

<mosaic_0001>
module attributes {stable_mosaic.version = 11 : i64} {
  func.func @_isru_kernel(%arg0: i32, %arg1: memref<1xf32, #tpu.memory_space<smem>>, %arg2: memref<16x128xf32, #tpu.memory_space<vmem>>, %arg3: memref<16x128xf32, #tpu.memory_space<vmem>>) attributes {dimension_semantics = [#tpu.dimension_semantics<parallel>], iteration_bounds = array<i64: 1>, scalar_prefetch = 0 : i64, scratch_operands = 0 : i64, tpu.core_type = #tpu.core_type<tc>, window_params = [{transform_indices = @transform_0, window_bounds = array<i64: 1>}, {transform_indices = @transform_1, window_bounds = array<i64: 16, 128>}, {transform_indices = @transform_2, window_bounds = array<i64: 16, 128>}]} {
    %c0 = arith.constant 0 : index
    %0 = memref.load %arg1[%c0] : memref<1xf32, #tpu.memory_space<smem>>
    %c0_0 = arith.constant 0 : index
    %c0_1 = arith.constant 0 : index
    %1 = vector.load %arg2[%c0_0, %c0_1] : memref<16x128xf32, #tpu.memory_space<vmem>>, vector<16x128xf32>
    %2 = vector.broadcast %0 : f32 to vector<16x128xf32>
    %3 = arith.mulf %2, %1 : vector<16x128xf32>
    %4 = arith.mulf %3, %1 : vector<16x128xf32>
    %cst = arith.constant 1.000000e+00 : f32
    %5 = vector.broadcast %cst : f32 to vector<16x128xf32>
    %6 = arith.addf %5, %4 : vector<16x128xf32>
    %7 = math.rsqrt %6 : vector<16x128xf32>
    %8 = arith.mulf %1, %7 : vector<16x128xf32>
    %c0_2 = arith.constant 0 : index
    %c0_3 = arith.constant 0 : index
    %9 = vector.load %arg3[%c0_2, %c0_3] : memref<16x128xf32, #tpu.memory_space<vmem>>, vector<16x128xf32>
    tpu.vector_store %arg3[%c0_2, %c0_3], %8 {strides = array<i32>} : memref<16x128xf32, #tpu.memory_space<vmem>>, vector<16x128xf32>,
    return
  }
  func.func @transform_0(%arg0: i32) -> i32 {
    %c0_i32 = arith.constant 0 : i32
    %c0_i32_0 = arith.constant 0 : i32
    return %c0_i32 : i32
  }
  func.func @transform_1(%arg0: i32) -> (i32, i32) {
    %c0_i32 = arith.constant 0 : i32
    %c0_i32_0 = arith.constant 0 : i32
    return %arg0, %c0_i32 : i32, i32
  }
  func.func @transform_2(%arg0: i32) -> (i32, i32) {
    %c0_i32 = arith.constant 0 : i32
    %c0_i32_0 = arith.constant 0 : i32
    return %arg0, %c0_i32 : i32, i32
  }
}

</mosaic_0001>

<bundles_post_ra>
// kernel: tpu_custom_call.1
= control target key start
LH: loop header
LB: loop body
LE: loop exit
PB: predicated region body
PF: predicated region fallthrough
CT: control target
= control target key end

     0   :  { %8 = vsyncpa [#allocation4], 0  ;;  %s176_s0 = inlined_call_operand.<no memory space> [shape: f32[1], index: 0, kind: input, shape index: {}]   ;;  %s177_s1 = inlined_call_operand.hbm [shape: f32[16,128], index: 1, kind: input, shape index: {}]   ;;  %s178_s2 = inlined_call_operand.hbm [shape: f32[16,128], index: 2, kind: output, shape index: {}]  }
   0x1   :  { %9 = vsyncpa [#allocation5], 0  ;;  %s16_s11 = sshll.u32 %s177_s1, 4  ;;  %s142_s12 = smov [#allocation3]   ;;  %s17_s11 = int_to_ptr.hbm [resolvable:$true] %s16_s11 }
   0x2   :  { %s18_s13 = sshll.u32 %s142_s12, 4  ;;  %s143_s14 = smov 128   ;;  %s19_s13 = int_to_ptr.vmem [resolvable:$true] %s18_s13 }
   0x3   :  { %s144_s15 = smov 8  }
   0x4   :  { %24 = dma.hbm_to_vmem [thread:$0]  %s17_s11, 256, %s19_s13, [#allocation4], %s143_s14, %s143_s14, %s144_s15  }
   0x5   :  { %138 = dma.done.wait [#allocation4], 256  }
   0x6   :  { %139 = vsyncadd [#allocation4], 4294967040  ;;  %v32_v0 = vstv %s176_s0  ;;  %v30_v1 = vld [vmem:[#allocation3] sm:$0xff]  ;;  %v31_v2 = vld [vmem:[#allocation3 + $0x8] sm:$0xff]  ;;  %s145_s0 = smov [#allocation6]   ;;  %s69_s20 = sshll.u32 %s178_s2, 4  ;;  %s70_s20 = int_to_ptr.hbm [resolvable:$true] %s69_s20 }
   0x7   :  { %v33_v3 = vmul.f32 %v32_v0, %v30_v1  ;;  %v34_v4 = vmul.f32 %v32_v0, %v31_v2  ;;  %s67_s1 = sshll.u32 %s145_s0, 4  ;;  %s68_s1 = int_to_ptr.vmem [resolvable:$true] %s67_s1 }
   0x9   :  { %v35_v5 = vmul.f32 %v33_v3, %v30_v1  ;;  %v36_v6 = vmul.f32 %v34_v4, %v31_v2 }
   0xb   :  { %v37_v7 = vadd.f32 1.0, %v35_v5  ;;  %v38_v8 = vadd.f32 1.0, %v36_v6 }
   0xd   :  { %86 = vrsqrt.f32 %v37_v7  ;;  %vm45_vm0 = vweird.f32 %v37_v7  ;;  %vm55_vm2 = vweird.f32 %v38_v8 }
   0xe   :  { %88 = vrsqrt.f32 %v38_v8 }
  0x13   :  { %v87_v9 = vpop.eup %86 }
  0x14   :  { %v89_v10 = vpop.eup %88  ;;  %v40_v11 = vmul.f32 %v87_v9, %v37_v7  ;;  %vm46_vm1 = vweird.f32 %v87_v9 }
  0x15   :  { %v50_v12 = vmul.f32 %v89_v10, %v38_v8  ;;  %vm56_vm3 = vweird.f32 %v89_v10  ;;  %vm47_vm4 = vmor %vm45_vm0, %vm46_vm1 }
  0x16   :  { %v41_v13 = vmul.f32 %v87_v9, %v40_v11  ;;  %vm57_vm5 = vmor %vm55_vm2, %vm56_vm3 }
  0x17   :  { %v51_v14 = vmul.f32 %v89_v10, %v50_v12 }
  0x18   :  { %v42_v15 = vmul.f32 0.5, %v41_v13 }
  0x19   :  { %v52_v16 = vmul.f32 0.5, %v51_v14 }
  0x1a   :  { %v43_v17 = vsub.f32 1.5, %v42_v15 }
  0x1b   :  { %v53_v18 = vsub.f32 1.5, %v52_v16 }
  0x1c   :  { %v44_v19 = vmul.f32 %v87_v9, %v43_v17 }
  0x1d   :  { %v54_v20 = vmul.f32 %v89_v10, %v53_v18 }
  0x1e   :  { %v48_v21 = vsel %vm47_vm4, %v87_v9, %v44_v19 }
  0x1f   :  { %v59_v22 = vmul.f32 %v48_v21, %v30_v1  ;;  %v58_v23 = vsel %vm57_vm5, %v89_v10, %v54_v20 }
  0x20   :  { %v60_v24 = vmul.f32 %v58_v23, %v31_v2 }
  0x21   :  { %61 = vst [vmem:[#allocation6] sm:$0xff] %v59_v22 }
  0x22   :  { %62 = vst [vmem:[#allocation6 + $0x8] sm:$0xff] %v60_v24 }
  0x23   :  { %75 = dma.vmem_to_hbm [thread:$0]  %s68_s1, 256, %s70_s20, [#allocation5], %s143_s14, %s143_s14, %s144_s15  }
  0x24   :  { %140 = dma.done.wait [#allocation5], 256  }
  0x25   :  { %141 = vsyncadd [#allocation5], 4294967040 }
  0x26   :  { %80 = vsyncpa [#allocation4], 1 }
  0x27   :  { %81 = vsyncpa [#allocation5], 1 }

</bundles_post_ra>
